<compile_context>
chip_gen: v7x
topology: tpu7x:2x2x1
jax: 0.10.0
libtpu: 0.0.40
codegen_flags: <defaults>
</compile_context>

<pallas_src>
import functools

import jax
import jax.numpy as jnp
from jax.experimental import pallas as pl
from jax.experimental.pallas import tpu as pltpu


# ----------------------------------------------------------------------------
# Kernels
# ----------------------------------------------------------------------------

def _ln_rows_kernel(x_ref, w_ref, b_ref, o_ref, *, eps):
    """Normalize over the last (lane) axis. x_ref: (row_tile, hidden)."""
    x = x_ref[...].astype(jnp.float32)
    u = jnp.mean(x, axis=-1, keepdims=True)
    # Two-pass variance; (x - u) is recomputed below instead of being kept
    # live across the reduction -> at most one full-tile fp32 temp at a time.
    s = jnp.mean(jnp.square(x - u), axis=-1, keepdims=True)
    inv = jax.lax.rsqrt(s + eps)                 # eps inside the sqrt (TF style)
    y = (x - u) * inv
    o_ref[...] = (w_ref[...].astype(jnp.float32) * y
                  + b_ref[...].astype(jnp.float32)).astype(o_ref.dtype)


def _ln_cols_kernel(x_ref, w_ref, b_ref, o_ref, *, eps):
    """Lane-dense small-hidden path: normalize over the first (sublane) axis.
    x_ref: (hidden, col_tile); each column is one logical row."""
    x = x_ref[...].astype(jnp.float32)
    u = jnp.mean(x, axis=0, keepdims=True)
    s = jnp.mean(jnp.square(x - u), axis=0, keepdims=True)
    inv = jax.lax.rsqrt(s + eps)
    y = (x - u) * inv
    o_ref[...] = (w_ref[...].astype(jnp.float32) * y
                  + b_ref[...].astype(jnp.float32)).astype(o_ref.dtype)


# ----------------------------------------------------------------------------
# Budget / tiling helpers
# ----------------------------------------------------------------------------

_MAX_INPUT_TILE_BYTES = 8 << 20   # per-step input slab cap (~2.5 us on v7x HBM)
_MIN_GRID_STEPS = 2               # let v7x's 2 TensorCores both get work


def _vmem_limit_bytes():
    """~75% of physical VMEM, queried at trace time.

    ~48 MiB/TC on v7x (64 MiB physical), ~96 MiB on v5e/v6e (128 MiB physical).
    Falls back to the most conservative generation (v7x) if the query fails.
    """
    phys = 64 << 20
    try:
        phys = int(pltpu.get_tpu_info().vmem_capacity_bytes)
    except Exception:
        pass
    return (phys * 3) // 4


def _round_down(v, m):
    return (v // m) * m


def _round_up(v, m):
    return ((v + m - 1) // m) * m


def _pick_tile(n_norm_elems, n_indep, itemsize, align, vmem_limit):
    """How many independent rows/columns go in one block.

    Footprint model per independent (normalized) vector:
      2x double-buffered input + 2x double-buffered output (input dtype)
      + ~3 full-tile fp32 intermediates from the in-kernel fp32 math.
    """
    io_bytes = n_norm_elems * itemsize
    f32_bytes = n_norm_elems * 4
    per_elem = 4 * io_bytes + 3 * f32_bytes

    tile = max(1, vmem_limit // per_elem)
    # Also cap the raw input slab per step (bigger buys nothing past ~8 MiB).
    tile = min(tile, max(1, _MAX_INPUT_TILE_BYTES // max(1, io_bytes)))
    # TODO(synk): hidden-splitting two-pass fallback (partial sums over a
    # hidden grid axis) for hidden so large that even an `align`-row block
    # exceeds the VMEM budget.
    tile = max(align, _round_down(tile, align))
    # Don't make the block (much) bigger than the data itself.
    tile = min(tile, _round_up(n_indep, align))
    # Ensure >= _MIN_GRID_STEPS grid steps so the megacore can shard rows.
    if n_indep > align and pl.cdiv(n_indep, tile) < _MIN_GRID_STEPS:
        tile = max(align, _round_up(pl.cdiv(n_indep, _MIN_GRID_STEPS), align))
    return tile


# ----------------------------------------------------------------------------
# Wrapper
# ----------------------------------------------------------------------------

def layer_norm(x, weight, bias, eps=1e-12, row_tile=None):
    """TF-style LayerNorm over the last axis. x: (..., hidden)."""
    orig_shape = x.shape
    hidden = orig_shape[-1]
    rows = 1
    for d in orig_shape[:-1]:
        rows *= d
    x2 = x.reshape(rows, hidden)

    vmem_limit = _vmem_limit_bytes()
    compiler_params = pltpu.CompilerParams(
        dimension_semantics=("parallel",),       # v7x: shard rows across 2 TCs
        vmem_limit_bytes=vmem_limit,             # generation-aware (<= 75% phys)
    )

    if hidden >= 128:
        # ---- hidden on the lane axis: normalize over the last axis ---------
        align = 16 if x2.dtype.itemsize == 2 else 8
        if row_tile is None:
            row_tile = _pick_tile(hidden, rows, x2.dtype.itemsize, align,
                                  vmem_limit)
        grid = (pl.cdiv(rows, row_tile),)        # partial last block handled
        out = pl.pallas_call(
            functools.partial(_ln_rows_kernel, eps=eps),
            out_shape=jax.ShapeDtypeStruct((rows, hidden), x.dtype),
            grid_spec=pltpu.PrefetchScalarGridSpec(
                num_scalar_prefetch=0,
                grid=grid,
                in_specs=[
                    # If an xprof trace shows exposed DMA on v7x's short steps,
                    # try pipeline_mode=pl.Buffered(3) here.
                    pl.BlockSpec((row_tile, hidden), lambda i: (i, 0)),
                    pl.BlockSpec((1, hidden), lambda i: (0, 0)),
                    pl.BlockSpec((1, hidden), lambda i: (0, 0)),
                ],
                out_specs=pl.BlockSpec((row_tile, hidden), lambda i: (i, 0)),
            ),
            compiler_params=compiler_params,
        )(x2, weight.reshape(1, hidden), bias.reshape(1, hidden))
        return out.reshape(orig_shape)

    # ---- hidden < 128: lane-dense path --------------------------------------
    # Put the (many) independent rows on the 128-lane axis so loads and,
    # critically, output stores are unmasked full-lane ops instead of
    # 25%-occupancy masked stores for e.g. hidden=32.  The reduction simply
    # moves to the sublane axis; math is unchanged.
    xt = x2.T                                    # (hidden, rows)
    if rows >= 128:
        col_tile = (_pick_tile(hidden, rows, x2.dtype.itemsize, 128, vmem_limit)
                    if row_tile is None else row_tile)
    else:
        col_tile = rows                          # full-extent block is legal
    grid = (pl.cdiv(rows, col_tile),)
    out_t = pl.pallas_call(
        functools.partial(_ln_cols_kernel, eps=eps),
        out_shape=jax.ShapeDtypeStruct((hidden, rows), x.dtype),
        grid_spec=pltpu.PrefetchScalarGridSpec(
            num_scalar_prefetch=0,
            grid=grid,
            in_specs=[
                pl.BlockSpec((hidden, col_tile), lambda i: (0, i)),
                pl.BlockSpec((hidden, 1), lambda i: (0, 0)),
                pl.BlockSpec((hidden, 1), lambda i: (0, 0)),
            ],
            out_specs=pl.BlockSpec((hidden, col_tile), lambda i: (0, i)),
        ),
        compiler_params=compiler_params,
    )(xt, weight.reshape(hidden, 1), bias.reshape(hidden, 1))
    return out_t.T.reshape(orig_shape)


# ----------------------------------------------------------------------------
# Demo / correctness check
# ----------------------------------------------------------------------------

if __name__ == "__main__":
    key = jax.random.PRNGKey(0)
    batch, seq, hidden = 2, 8, 32

    x = jax.random.normal(key, (batch, seq, hidden), dtype=jnp.float32)

    # Deterministic parameter init matching nn.Parameter(torch.ones/zeros(hidden)).
    weight = jnp.ones((hidden,), dtype=jnp.float32)
    bias = jnp.zeros((hidden,), dtype=jnp.float32)

    y = layer_norm(x, weight, bias, eps=1e-12)
    jax.block_until_ready(y)

    # Reference check in plain JAX (same math as the PyTorch forward).
    u = jnp.mean(x, axis=-1, keepdims=True)
    s = jnp.mean((x - u) ** 2, axis=-1, keepdims=True)
    ref = weight * ((x - u) / jnp.sqrt(s + 1e-12)) + bias
    assert jnp.allclose(y, ref, atol=1e-5, rtol=1e-5), "mismatch vs reference"

    print("KERNEL_OK")
</pallas_src>

<mosaic_0001>
module attributes {stable_mosaic.version = 11 : i64} {
  func.func @_ln_cols_kernel(%arg0: i32, %arg1: memref<32x16xf32, #tpu.memory_space<vmem>>, %arg2: memref<32x1xf32, #tpu.memory_space<vmem>>, %arg3: memref<32x1xf32, #tpu.memory_space<vmem>>, %arg4: memref<32x16xf32, #tpu.memory_space<vmem>>) attributes {dimension_semantics = [#tpu.dimension_semantics<parallel>], iteration_bounds = array<i64: 1>, scalar_prefetch = 0 : i64, scratch_operands = 0 : i64, tpu.core_type = #tpu.core_type<tc>, window_params = [{transform_indices = @transform_0, window_bounds = array<i64: 32, 16>}, {pipeline_mode = #tpu.pipeline_mode<synchronous>, transform_indices = @transform_1, window_bounds = array<i64: 32, 1>}, {pipeline_mode = #tpu.pipeline_mode<synchronous>, transform_indices = @transform_2, window_bounds = array<i64: 32, 1>}, {transform_indices = @transform_3, window_bounds = array<i64: 32, 16>}]} {
    %c0 = arith.constant 0 : index
    %c0_0 = arith.constant 0 : index
    %0 = vector.load %arg1[%c0, %c0_0] : memref<32x16xf32, #tpu.memory_space<vmem>>, vector<32x16xf32>
    %cst = arith.constant dense<0.000000e+00> : vector<16xf32>
    %1 = vector.multi_reduction <add>, %0, %cst [0] : vector<32x16xf32> to vector<16xf32>
    %2 = vector.shape_cast %1 : vector<16xf32> to vector<1x16xf32>
    %cst_1 = arith.constant 3.200000e+01 : f32
    %3 = vector.broadcast %cst_1 : f32 to vector<1x16xf32>
    %4 = arith.divf %2, %3 : vector<1x16xf32>
    %5 = vector.broadcast %4 : vector<1x16xf32> to vector<32x16xf32>
    %6 = arith.subf %0, %5 : vector<32x16xf32>
    %7 = arith.mulf %6, %6 : vector<32x16xf32>
    %cst_2 = arith.constant dense<0.000000e+00> : vector<16xf32>
    %8 = vector.multi_reduction <add>, %7, %cst_2 [0] : vector<32x16xf32> to vector<16xf32>
    %9 = vector.shape_cast %8 : vector<16xf32> to vector<1x16xf32>
    %cst_3 = arith.constant 3.200000e+01 : f32
    %10 = vector.broadcast %cst_3 : f32 to vector<1x16xf32>
    %11 = arith.divf %9, %10 : vector<1x16xf32>
    %cst_4 = arith.constant 9.99999996E-13 : f32
    %12 = vector.broadcast %cst_4 : f32 to vector<1x16xf32>
    %13 = arith.addf %11, %12 : vector<1x16xf32>
    %14 = math.rsqrt %13 : vector<1x16xf32>
    %15 = vector.broadcast %4 : vector<1x16xf32> to vector<32x16xf32>
    %16 = arith.subf %0, %15 : vector<32x16xf32>
    %17 = vector.broadcast %14 : vector<1x16xf32> to vector<32x16xf32>
    %18 = arith.mulf %16, %17 : vector<32x16xf32>
    %c0_5 = arith.constant 0 : index
    %c0_6 = arith.constant 0 : index
    %19 = vector.load %arg2[%c0_5, %c0_6] : memref<32x1xf32, #tpu.memory_space<vmem>>, vector<32x1xf32>
    %20 = vector.broadcast %19 : vector<32x1xf32> to vector<32x16xf32>
    %21 = arith.mulf %20, %18 : vector<32x16xf32>
    %c0_7 = arith.constant 0 : index
    %c0_8 = arith.constant 0 : index
    %22 = vector.load %arg3[%c0_7, %c0_8] : memref<32x1xf32, #tpu.memory_space<vmem>>, vector<32x1xf32>
    %23 = vector.broadcast %22 : vector<32x1xf32> to vector<32x16xf32>
    %24 = arith.addf %21, %23 : vector<32x16xf32>
    %c0_9 = arith.constant 0 : index
    %c0_10 = arith.constant 0 : index
    %25 = vector.load %arg4[%c0_9, %c0_10] : memref<32x16xf32, #tpu.memory_space<vmem>>, vector<32x16xf32>
    tpu.vector_store %arg4[%c0_9, %c0_10], %24 {strides = array<i32>} : memref<32x16xf32, #tpu.memory_space<vmem>>, vector<32x16xf32>,
    return
  }
  func.func @transform_0(%arg0: i32) -> (i32, i32) {
    %c0_i32 = arith.constant 0 : i32
    %c0_i32_0 = arith.constant 0 : i32
    return %c0_i32, %arg0 : i32, i32
  }
  func.func @transform_1(%arg0: i32) -> (i32, i32) {
    %c0_i32 = arith.constant 0 : i32
    %c0_i32_0 = arith.constant 0 : i32
    %c0_i32_1 = arith.constant 0 : i32
    return %c0_i32, %c0_i32_0 : i32, i32
  }
  func.func @transform_2(%arg0: i32) -> (i32, i32) {
    %c0_i32 = arith.constant 0 : i32
    %c0_i32_0 = arith.constant 0 : i32
    %c0_i32_1 = arith.constant 0 : i32
    return %c0_i32, %c0_i32_0 : i32, i32
  }
  func.func @transform_3(%arg0: i32) -> (i32, i32) {
    %c0_i32 = arith.constant 0 : i32
    %c0_i32_0 = arith.constant 0 : i32
    return %c0_i32, %arg0 : i32, i32
  }
}

</mosaic_0001>

<bundles_post_ra>
// kernel: tpu_custom_call.1
= control target key start
LH: loop header
LB: loop body
LE: loop exit
PB: predicated region body
PF: predicated region fallthrough
CT: control target
= control target key end

     0   :  { %v131_v0 = vmov 0   ;;  %vm18_vm0 = vcmask 130048   ;;  %s212_s1 = inlined_call_operand.vmem [shape: f32[32,1], index: 1, kind: input, shape index: {}]   ;;  %s213_s2 = inlined_call_operand.vmem [shape: f32[32,1], index: 2, kind: input, shape index: {}]   ;;  %s214_s0 = inlined_call_operand.vmem [shape: f32[32,16], index: 0, kind: input, shape index: {}]   ;;  %s215_s3 = inlined_call_operand.vmem [shape: f32[32,16], index: 3, kind: output, shape index: {}]  }
   0x1   :  { %128 = vset.pattern.permute.xlu1 %v131_v0  ;;  %127 = vset.pattern.permute.xlu0 %v131_v0  ;;  %v64_v1 = vld [vmem:[%s212_s1 + $0x10] sm:$0xff]  ;;  %v62_v2 = vld [vmem:[%s212_s1] sm:$0xff]  ;;  %v65_v3 = vld [vmem:[%s212_s1 + $0x18] sm:$0xff] }
   0x2   :  { %78 = vperm.xlu1 %128, %v64_v1   ;;  %68 = vperm.xlu0 %127, %v62_v2   ;;  %v63_v4 = vld [vmem:[%s212_s1 + $0x8] sm:$0xff]  ;;  %v90_v6 = vld [vmem:[%s213_s2] sm:$0xff]  ;;  %v93_v7 = vld [vmem:[%s213_s2 + $0x18] sm:$0xff] }
   0x3   :  { %v91_v5 = vld [vmem:[%s213_s2 + $0x8] sm:$0xff]  ;;  %v92_v8 = vld [vmem:[%s213_s2 + $0x10] sm:$0xff]  ;;  %v14_v9 = vld [vmem:[%s214_s0] sm:$0xff] }
   0x4   :  { %v15_v10 = vld [vmem:[%s214_s0 + $0x8] sm:$0xff]  ;;  %v19_v11 = vsel %vm18_vm0, %v14_v9, 0.0  ;;  %v16_v13 = vld [vmem:[%s214_s0 + $0x10] sm:$0xff]  ;;  %v17_v16 = vld [vmem:[%s214_s0 + $0x18] sm:$0xff] }
   0x5   :  { %v20_v12 = vsel %vm18_vm0, %v15_v10, 0.0  ;;  %v22_v15 = vsel %vm18_vm0, %v16_v13, 0.0  ;;  %v24_v18 = vsel %vm18_vm0, %v17_v16, 0.0 }
   0x6   :  { %83 = vperm.xlu1 %128, %v65_v3   ;;  %73 = vperm.xlu0 %127, %v63_v4   ;;  %v21_v14 = vadd.f32 %v20_v12, %v19_v11 }
   0x8   :  { %v23_v17 = vadd.f32 %v22_v15, %v21_v14 }
   0xa   :  { %101 = vperm.xlu1 %128, %v91_v5   ;;  %96 = vperm.xlu0 %127, %v90_v6   ;;  %v25_v19 = vadd.f32 %v24_v18, %v23_v17 }
   0xc   :  { %v26_v20 = vrot.slane %v25_v19, 4 }
   0xe   :  { %111 = vperm.xlu1 %128, %v93_v7   ;;  %106 = vperm.xlu0 %127, %v92_v8   ;;  %v27_v21 = vadd.f32 %v26_v20, %v25_v19 }
  0x10   :  { %v28_v22 = vrot.slane %v27_v21, 2 }
  0x12   :  { %v29_v23 = vadd.f32 %v28_v22, %v27_v21 }
  0x14   :  { %v30_v24 = vrot.slane %v29_v23, 1 }
  0x16   :  { %v31_v25 = vadd.f32 %v30_v24, %v29_v23 }
  0x18   :  { %v33_v26 = vmul.f32 0.03125, %v31_v25 }
  0x1a   :  { %v34_v27 = vsub.f32 %v14_v9, %v33_v26  ;;  %v35_v28 = vsub.f32 %v15_v10, %v33_v26  ;;  %v36_v29 = vsub.f32 %v16_v13, %v33_v26  ;;  %v37_v32 = vsub.f32 %v17_v16, %v33_v26 }
  0x1c   :  { %v38_v30 = vmul.f32 %v34_v27, %v34_v27  ;;  %v39_v31 = vmul.f32 %v35_v28, %v35_v28  ;;  %v40_v33 = vmul.f32 %v36_v29, %v36_v29  ;;  %v41_v37 = vmul.f32 %v37_v32, %v37_v32 }
  0x1e   :  { %v42_v34 = vsel %vm18_vm0, %v38_v30, 0.0  ;;  %v43_v35 = vsel %vm18_vm0, %v39_v31, 0.0  ;;  %v45_v38 = vsel %vm18_vm0, %v40_v33, 0.0  ;;  %v47_v40 = vsel %vm18_vm0, %v41_v37, 0.0 }
  0x1f   :  { %v44_v36 = vadd.f32 %v43_v35, %v42_v34 }
  0x21   :  { %v46_v39 = vadd.f32 %v45_v38, %v44_v36 }
  0x23   :  { %v48_v41 = vadd.f32 %v47_v40, %v46_v39 }
  0x25   :  { %v49_v42 = vrot.slane %v48_v41, 4 }
  0x27   :  { %v50_v43 = vadd.f32 %v49_v42, %v48_v41 }
  0x29   :  { %v51_v44 = vrot.slane %v50_v43, 2 }
  0x2b   :  { %v52_v45 = vadd.f32 %v51_v44, %v50_v43 }
  0x2d   :  { %v53_v46 = vrot.slane %v52_v45, 1 }
  0x2f   :  { %v54_v47 = vadd.f32 %v53_v46, %v52_v45 }
  0x31   :  { %v55_v48 = vmul.f32 0.03125, %v54_v47 }
  0x33   :  { %v56_v49 = vadd.f32 1e-12, %v55_v48 }
  0x35   :  { %129 = vrsqrt.f32 %v56_v49 }
  0x3f   :  { %v130_v50 = vpop.eup %129 }
  0x40   :  { %v58_v53 = vmul.f32 %v130_v50, %v34_v27  ;;  %v59_v54 = vmul.f32 %v130_v50, %v35_v28  ;;  %v60_v57 = vmul.f32 %v130_v50, %v36_v29  ;;  %v61_v59 = vmul.f32 %v130_v50, %v37_v32 }
  0x81   :  { %v79_v51 = vpop.permute.xlu1 %78  ;;  %v69_v52 = vpop.permute.xlu0 %68 }
  0x82   :  { %v86_v58 = vmul.f32 %v69_v52, %v58_v53  ;;  %v88_v1 = vmul.f32 %v79_v51, %v60_v57 }
  0x85   :  { %v84_v55 = vpop.permute.xlu1 %83  ;;  %v74_v56 = vpop.permute.xlu0 %73 }
  0x86   :  { %v87_v60 = vmul.f32 %v74_v56, %v59_v54  ;;  %v89_v2 = vmul.f32 %v84_v55, %v61_v59 }
  0x89   :  { %v102_v61 = vpop.permute.xlu1 %101  ;;  %v97_v62 = vpop.permute.xlu0 %96 }
  0x8a   :  { %v115_v63 = vadd.f32 %v102_v61, %v87_v60  ;;  %v114_v0 = vadd.f32 %v97_v62, %v86_v58 }
  0x8c   :  { %119 = vst.msk [vmem:[%s215_s3 + $0x8] sm:$0xff] %vm18_vm0, %v115_v63  ;;  %118 = vst.msk [vmem:[%s215_s3] sm:$0xff] %vm18_vm0, %v114_v0 }
  0x8d   :  { %v112_v3 = vpop.permute.xlu1 %111  ;;  %v107_v4 = vpop.permute.xlu0 %106 }
  0x8e   :  { %v117_v5 = vadd.f32 %v112_v3, %v89_v2  ;;  %v116_v6 = vadd.f32 %v107_v4, %v88_v1 }
  0x90   :  { %121 = vst.msk [vmem:[%s215_s3 + $0x18] sm:$0xff] %vm18_vm0, %v117_v5  ;;  %120 = vst.msk [vmem:[%s215_s3 + $0x10] sm:$0xff] %vm18_vm0, %v116_v6 }

</bundles_post_ra>
